<compile_context>
chip_gen: v5e
topology: v5e:2x2
jax: 0.10.0
libtpu: 0.0.40
codegen_flags: <defaults>
</compile_context>

<pallas_src>
import numpy as np
import jax
import jax.numpy as jnp
from jax.experimental import pallas as pl
from jax.experimental.pallas import tpu as pltpu


_VMEM_BUDGET = 44 * 1024 * 1024      # working-set target; leaves headroom in v7x's 64 MiB
_VMEM_CAP = 64 * 1024 * 1024         # never ask for more scoped VMEM than v7x has


def _round_up(a, b):
    return ((a + b - 1) // b) * b


def _divisor_tile(D, cap):
    """Largest multiple of 128 that divides D and is <= cap (>=128)."""
    best = 128
    for t in range(128, min(D, cap) + 1, 128):
        if D % t == 0:
            best = t
    return best


def _make_kernel(K, Fp):
    """Kernel over one (N, LT) lane tile (lane axis = folded batch*feature)."""
    K_f = float(K)

    def kernel(x_ref, fwd_ref, inv_ref, o_ref):
        x = x_ref[...]                                                   # (N, LT)

        # Forward real-DFT on the MXU.  Rows [0:Fp) = Re(rfft), [Fp:2Fp) = Im.
        # Accumulation is f32, so amp^2 / threshold math is f32 regardless of
        # the operand dtype.
        ff = jnp.dot(fwd_ref[...], x, preferred_element_type=jnp.float32)  # (2Fp, LT) f32
        fr = ff[:Fp]
        fi = ff[Fp:]
        amp2 = fr * fr + fi * fi               # squared magnitude (monotone, no sqrt)

        lanes = amp2.shape[1]
        neg_one = jnp.full((1, lanes), -1.0, dtype=jnp.float32)   # amp2 >= 0 always

        # K-th largest amp^2 per lane (duplicates counted exactly like
        # torch.topk(...)[-1]).  Masked-max: pass j maxes over values strictly
        # below pass j-1's max, so the full (Fp, LT) array is only *read*
        # (2 sweeps/pass) and never rewritten.
        m = jnp.max(amp2, axis=0, keepdims=True)                          # (1, LT)
        cnt = jnp.sum((amp2 == m).astype(jnp.float32), axis=0, keepdims=True)
        thr = jnp.where(cnt >= K_f, m, neg_one)
        removed = cnt
        prev = m
        for _ in range(K - 1):                                            # K tiny & static
            masked = jnp.where(amp2 < prev, amp2, neg_one)
            m = jnp.max(masked, axis=0, keepdims=True)
            cnt = jnp.sum((amp2 == m).astype(jnp.float32), axis=0, keepdims=True)
            crossing = jnp.logical_and(removed < K_f, removed + cnt >= K_f)
            thr = jnp.where(crossing, m, thr)
            removed = removed + cnt
            prev = m

        keep = (amp2 >= thr).astype(jnp.float32)       # == NOT (amp < thr); ties kept

        # Mask Re/Im halves in place: view ff as (2, Fp, LT) (free reshape since
        # Fp % 8 == 0) and broadcast the mask on the leading axis -- no
        # concatenate, no extra (2Fp, LT) data temporary.  Cast to bf16 so the
        # inverse DFT runs as a single-pass bf16 MXU matmul (f32 accumulation).
        ffk = (ff.reshape(2, Fp, lanes) * keep[None]).reshape(2 * Fp, lanes)
        ffk = ffk.astype(jnp.bfloat16)

        y = jnp.dot(inv_ref[...], ffk, preferred_element_type=jnp.float32)   # (N, LT)
        o_ref[...] = y.astype(o_ref.dtype)

    return kernel


def _dft_bases(N, F, Fp, fwd_dtype):
    """Stacked forward (2Fp, N) and inverse (N, 2Fp) real-DFT basis matrices."""
    n = np.arange(N, dtype=np.float64)
    f = np.arange(F, dtype=np.float64)
    ang = 2.0 * np.pi * f[:, None] * n[None, :] / N              # (F, N)
    fwd = np.zeros((2 * Fp, N), dtype=np.float64)
    fwd[:F] = np.cos(ang)                                        # Re(rfft) basis
    fwd[Fp:Fp + F] = -np.sin(ang)                                # Im(rfft) basis
    w = np.full((F,), 2.0)
    w[0] = 1.0
    w[F - 1] = 1.0                                               # Nyquist (N even)
    inv = np.zeros((N, 2 * Fp), dtype=np.float64)
    inv[:, :F] = np.cos(ang.T) * w[None, :] / N                  # acts on Re
    inv[:, Fp:Fp + F] = -np.sin(ang.T) * w[None, :] / N          # acts on Im
    return jnp.asarray(fwd, fwd_dtype), jnp.asarray(inv, jnp.bfloat16)


def _vmem_plan(N, Fp, op_bytes):
    """(constant bytes, bytes per lane of tile width) of the per-step VMEM working set."""
    # Both bases are double-buffered by the pipeliner (though never re-fetched,
    # since their index_map is constant) -> count 2 buffers each.
    base = 2 * (2 * Fp * N) * op_bytes + 2 * (2 * Fp * N) * 2        # fwd + bf16 inv
    per_lane = (2 * N * op_bytes + 2 * N * 4)                        # dbl-buffered in + f32 out tile
    per_lane += (2 * Fp) * 4 * 3 + (2 * Fp) * 2                      # ff/amp2/keep temps + bf16 ffk
    return base, per_lane


def _lane_cap(base, per_lane):
    avail = max(_VMEM_BUDGET - base, 0)
    cap = (avail // max(per_lane, 1)) // 128 * 128
    return max(128, cap)


def _vmem_limit(base, per_lane, LT):
    est = base + per_lane * LT
    return int(min(_VMEM_CAP, max(32 << 20, est * 5 // 4)))


def frequency_attention(x, K=4, *, max_lane_tile=1024, forward_in_bf16=False):
    """x: (B, N, D), N even.  ETSFormer FrequencyAttention forward (dropout p=0).

    forward_in_bf16: also run the forward DFT matmul with bf16 operands (the
    inverse always is).  Faster on every TPU generation, but amplitudes then
    carry ~0.4% error, so the kept frequency can flip when two amplitudes
    nearly tie at the K-th rank; off by default to keep selection faithful to
    an f32 rfft.
    """
    B, N, D = x.shape
    assert N % 2 == 0, "use an even sequence length (matches irfft default n)"
    F = N // 2 + 1
    assert 1 <= K <= F, "K must not exceed the number of rfft frequencies"
    Fp = _round_up(F, 8)                     # pad frequency axis to a sublane multiple

    op_dtype = jnp.bfloat16 if forward_in_bf16 else jnp.float32
    op_bytes = 2 if forward_in_bf16 else 4
    fwd, inv = _dft_bases(N, F, Fp, op_dtype)          # (2Fp, N) op_dtype, (N, 2Fp) bf16
    kernel = _make_kernel(K, Fp)

    base_b, per_lane_b = _vmem_plan(N, Fp, op_bytes)
    lt_cap = _lane_cap(base_b, per_lane_b)

    out_dtype = x.dtype
    x_in = x.astype(op_dtype) if forward_in_bf16 else x

    if D % 128 == 0:
        # ---- Fast path: tile the feature axis directly; no wrapper transposes. ----
        LT = _divisor_tile(D, min(max_lane_tile, lt_cap))
        if B * (D // LT) < 2 and D >= 256:             # keep both v7x TensorCores busy
            LT = _divisor_tile(D, D // 2)
        cost = pl.CostEstimate(
            flops=8 * Fp * N * B * D,
            transcendentals=0,
            bytes_accessed=B * N * D * (op_bytes + 4) + 2 * Fp * N * (op_bytes + 2))
        return pl.pallas_call(
            kernel,
            out_shape=jax.ShapeDtypeStruct((B, N, D), out_dtype),
            grid_spec=pltpu.PrefetchScalarGridSpec(
                num_scalar_prefetch=0,
                grid=(B, D // LT),
                in_specs=[
                    pl.BlockSpec((None, N, LT), lambda b, j: (b, 0, j)),   # x lane tile
                    pl.BlockSpec((2 * Fp, N), lambda b, j: (0, 0)),        # fwd basis
                    pl.BlockSpec((N, 2 * Fp), lambda b, j: (0, 0)),        # inv basis (bf16)
                ],
                out_specs=pl.BlockSpec((None, N, LT), lambda b, j: (b, 0, j)),
            ),
            compiler_params=pltpu.CompilerParams(
                dimension_semantics=("parallel", "parallel"),
                vmem_limit_bytes=_vmem_limit(base_b, per_lane_b, LT)),
            cost_estimate=cost,
        )(x_in, fwd, inv)

    # ---- General path: fold batch into the lane axis, (N, B*D) lane tiles. --------
    L = B * D
    Lr = _round_up(L, 128)
    LT = max(128, (min(max_lane_tile, lt_cap, Lr) // 128) * 128)
    if Lr >= 256 and LT >= Lr:                          # >=2 lane tiles for v7x's 2 TCs
        LT = _round_up(Lr // 2, 128)
    num_tiles = -(-Lr // LT)
    L_pad = num_tiles * LT

    xt = jnp.transpose(x_in, (1, 0, 2)).reshape(N, L)
    if L_pad != L:
        # Zero lanes -> thr = 0 -> keep-all-of-zero -> zero output; sliced off below.
        xt = jnp.pad(xt, ((0, 0), (0, L_pad - L)))

    cost = pl.CostEstimate(
        flops=8 * Fp * N * L_pad,
        transcendentals=0,
        bytes_accessed=N * L_pad * (op_bytes + 4) + 2 * Fp * N * (op_bytes + 2))

    yt = pl.pallas_call(
        kernel,
        out_shape=jax.ShapeDtypeStruct((N, L_pad), out_dtype),
        grid_spec=pltpu.PrefetchScalarGridSpec(
            num_scalar_prefetch=0,
            grid=(num_tiles,),
            in_specs=[
                pl.BlockSpec((N, LT), lambda j: (0, j)),        # x lane tile
                pl.BlockSpec((2 * Fp, N), lambda j: (0, 0)),    # stacked forward basis
                pl.BlockSpec((N, 2 * Fp), lambda j: (0, 0)),    # stacked inverse basis (bf16)
            ],
            out_specs=pl.BlockSpec((N, LT), lambda j: (0, j)),
        ),
        compiler_params=pltpu.CompilerParams(
            dimension_semantics=("parallel",),
            vmem_limit_bytes=_vmem_limit(base_b, per_lane_b, LT)),
        cost_estimate=cost,
    )(xt, fwd, inv)

    return jnp.transpose(yt[:, :L].reshape(N, B, D), (1, 0, 2))


def _reference(x, K=4):
    """Pure-JAX reference mirroring the PyTorch module (dropout p=0)."""
    freqs = jnp.fft.rfft(x, axis=1)
    amp = jnp.abs(freqs)
    topk = -jnp.sort(-amp, axis=1)[:, K - 1:K, :]               # K-th largest
    kept = jnp.where(amp < topk, jnp.zeros_like(freqs), freqs)
    return jnp.fft.irfft(kept, axis=1).astype(x.dtype)


if __name__ == "__main__":
    key = jax.random.PRNGKey(0)
    configs = [((2, 16, 64), 4),      # fold path, single 128-lane tile
               ((3, 32, 80), 5),      # fold path, padded to 2 x 128 lane tiles (megacore)
               ((2, 16, 128), 4)]     # fast path: D % 128 == 0, no wrapper transposes
    for shape, K in configs:
        key, sub = jax.random.split(key)
        x = jax.random.normal(sub, shape, dtype=jnp.float32)
        out = jax.block_until_ready(frequency_attention(x, K=K))
        ref = jax.block_until_ready(_reference(x, K=K))
        # bf16 inverse-DFT operands -> ~1e-2 absolute rounding on O(1) outputs;
        # a wrongly kept/dropped frequency would show up as O(0.3+) errors.
        np.testing.assert_allclose(np.asarray(out), np.asarray(ref),
                                   rtol=2e-2, atol=5e-2)
    print("KERNEL_OK")
</pallas_src>

<mosaic_0001>
module attributes {stable_mosaic.version = 11 : i64} {
  func.func @kernel(%arg0: i32, %arg1: memref<16x128xf32, #tpu.memory_space<vmem>>, %arg2: memref<32x16xf32, #tpu.memory_space<vmem>>, %arg3: memref<16x32xbf16, #tpu.memory_space<vmem>>, %arg4: memref<16x128xf32, #tpu.memory_space<vmem>>) attributes {dimension_semantics = [#tpu.dimension_semantics<parallel>], iteration_bounds = array<i64: 1>, scalar_prefetch = 0 : i64, scratch_operands = 0 : i64, tpu.core_type = #tpu.core_type<tc>, window_params = [{transform_indices = @transform_0, window_bounds = array<i64: 16, 128>}, {pipeline_mode = #tpu.pipeline_mode<synchronous>, transform_indices = @transform_1, window_bounds = array<i64: 32, 16>}, {pipeline_mode = #tpu.pipeline_mode<synchronous>, transform_indices = @transform_2, window_bounds = array<i64: 16, 32>}, {transform_indices = @transform_3, window_bounds = array<i64: 16, 128>}]} {
    %c0 = arith.constant 0 : index
    %c0_0 = arith.constant 0 : index
    %0 = vector.load %arg1[%c0, %c0_0] : memref<16x128xf32, #tpu.memory_space<vmem>>, vector<16x128xf32>
    %c0_1 = arith.constant 0 : index
    %c0_2 = arith.constant 0 : index
    %1 = vector.load %arg2[%c0_1, %c0_2] : memref<32x16xf32, #tpu.memory_space<vmem>>, vector<32x16xf32>
    %cst = arith.constant dense<0.000000e+00> : vector<32x128xf32>
    %2 = tpu.matmul %1, %0, %cst {dimension_numbers = #tpu.dot_dimension_numbers<[1], [0], [0], [1], [0, 0, 1, 1], [], []>} : vector<32x16xf32>, vector<16x128xf32>, vector<32x128xf32> -> vector<32x128xf32>
    %3 = vector.extract_strided_slice %2 {offsets = [0, 0], sizes = [16, 128], strides = [1, 1]} : vector<32x128xf32> to vector<16x128xf32>
    %4 = vector.extract_strided_slice %2 {offsets = [16, 0], sizes = [16, 128], strides = [1, 1]} : vector<32x128xf32> to vector<16x128xf32>
    %5 = arith.mulf %3, %3 : vector<16x128xf32>
    %6 = arith.mulf %4, %4 : vector<16x128xf32>
    %7 = arith.addf %5, %6 : vector<16x128xf32>
    %cst_3 = arith.constant -1.000000e+00 : f32
    %8 = vector.broadcast %cst_3 : f32 to vector<1x128xf32>
    %cst_4 = arith.constant dense<0xFF800000> : vector<128xf32>
    %9 = vector.multi_reduction <maximumf>, %7, %cst_4 [0] : vector<16x128xf32> to vector<128xf32>
    %10 = vector.shape_cast %9 : vector<128xf32> to vector<1x128xf32>
    %11 = vector.broadcast %10 : vector<1x128xf32> to vector<16x128xf32>
    %12 = arith.cmpf oeq, %7, %11 : vector<16x128xf32>
    %13 = arith.extui %12 : vector<16x128xi1> to vector<16x128xi32>
    %14 = arith.sitofp %13 : vector<16x128xi32> to vector<16x128xf32>
    %cst_5 = arith.constant dense<0.000000e+00> : vector<128xf32>
    %15 = vector.multi_reduction <add>, %14, %cst_5 [0] : vector<16x128xf32> to vector<128xf32>
    %16 = vector.shape_cast %15 : vector<128xf32> to vector<1x128xf32>
    %cst_6 = arith.constant 4.000000e+00 : f32
    %17 = vector.broadcast %cst_6 : f32 to vector<1x128xf32>
    %18 = arith.cmpf oge, %16, %17 : vector<1x128xf32>
    %19 = arith.select %18, %10, %8 : vector<1x128xi1>, vector<1x128xf32>
    %20 = vector.broadcast %10 : vector<1x128xf32> to vector<16x128xf32>
    %21 = arith.cmpf olt, %7, %20 : vector<16x128xf32>
    %22 = vector.shape_cast %8 : vector<1x128xf32> to vector<1x128xf32>
    %23 = vector.broadcast %22 : vector<1x128xf32> to vector<16x128xf32>
    %24 = arith.select %21, %7, %23 : vector<16x128xi1>, vector<16x128xf32>
    %cst_7 = arith.constant dense<0xFF800000> : vector<128xf32>
    %25 = vector.multi_reduction <maximumf>, %24, %cst_7 [0] : vector<16x128xf32> to vector<128xf32>
    %26 = vector.shape_cast %25 : vector<128xf32> to vector<1x128xf32>
    %27 = vector.broadcast %26 : vector<1x128xf32> to vector<16x128xf32>
    %28 = arith.cmpf oeq, %7, %27 : vector<16x128xf32>
    %29 = arith.extui %28 : vector<16x128xi1> to vector<16x128xi32>
    %30 = arith.sitofp %29 : vector<16x128xi32> to vector<16x128xf32>
    %cst_8 = arith.constant dense<0.000000e+00> : vector<128xf32>
    %31 = vector.multi_reduction <add>, %30, %cst_8 [0] : vector<16x128xf32> to vector<128xf32>
    %32 = vector.shape_cast %31 : vector<128xf32> to vector<1x128xf32>
    %cst_9 = arith.constant 4.000000e+00 : f32
    %33 = vector.broadcast %cst_9 : f32 to vector<1x128xf32>
    %34 = arith.cmpf olt, %16, %33 : vector<1x128xf32>
    %35 = arith.addf %16, %32 : vector<1x128xf32>
    %cst_10 = arith.constant 4.000000e+00 : f32
    %36 = vector.broadcast %cst_10 : f32 to vector<1x128xf32>
    %37 = arith.cmpf oge, %35, %36 : vector<1x128xf32>
    %38 = arith.andi %34, %37 : vector<1x128xi1>
    %39 = arith.select %38, %26, %19 : vector<1x128xi1>, vector<1x128xf32>
    %40 = arith.addf %16, %32 : vector<1x128xf32>
    %41 = vector.broadcast %26 : vector<1x128xf32> to vector<16x128xf32>
    %42 = arith.cmpf olt, %7, %41 : vector<16x128xf32>
    %43 = vector.shape_cast %8 : vector<1x128xf32> to vector<1x128xf32>
    %44 = vector.broadcast %43 : vector<1x128xf32> to vector<16x128xf32>
    %45 = arith.select %42, %7, %44 : vector<16x128xi1>, vector<16x128xf32>
    %cst_11 = arith.constant dense<0xFF800000> : vector<128xf32>
    %46 = vector.multi_reduction <maximumf>, %45, %cst_11 [0] : vector<16x128xf32> to vector<128xf32>
    %47 = vector.shape_cast %46 : vector<128xf32> to vector<1x128xf32>
    %48 = vector.broadcast %47 : vector<1x128xf32> to vector<16x128xf32>
    %49 = arith.cmpf oeq, %7, %48 : vector<16x128xf32>
    %50 = arith.extui %49 : vector<16x128xi1> to vector<16x128xi32>
    %51 = arith.sitofp %50 : vector<16x128xi32> to vector<16x128xf32>
    %cst_12 = arith.constant dense<0.000000e+00> : vector<128xf32>
    %52 = vector.multi_reduction <add>, %51, %cst_12 [0] : vector<16x128xf32> to vector<128xf32>
    %53 = vector.shape_cast %52 : vector<128xf32> to vector<1x128xf32>
    %cst_13 = arith.constant 4.000000e+00 : f32
    %54 = vector.broadcast %cst_13 : f32 to vector<1x128xf32>
    %55 = arith.cmpf olt, %40, %54 : vector<1x128xf32>
    %56 = arith.addf %40, %53 : vector<1x128xf32>
    %cst_14 = arith.constant 4.000000e+00 : f32
    %57 = vector.broadcast %cst_14 : f32 to vector<1x128xf32>
    %58 = arith.cmpf oge, %56, %57 : vector<1x128xf32>
    %59 = arith.andi %55, %58 : vector<1x128xi1>
    %60 = arith.select %59, %47, %39 : vector<1x128xi1>, vector<1x128xf32>
    %61 = arith.addf %40, %53 : vector<1x128xf32>
    %62 = vector.broadcast %47 : vector<1x128xf32> to vector<16x128xf32>
    %63 = arith.cmpf olt, %7, %62 : vector<16x128xf32>
    %64 = vector.shape_cast %8 : vector<1x128xf32> to vector<1x128xf32>
    %65 = vector.broadcast %64 : vector<1x128xf32> to vector<16x128xf32>
    %66 = arith.select %63, %7, %65 : vector<16x128xi1>, vector<16x128xf32>
    %cst_15 = arith.constant dense<0xFF800000> : vector<128xf32>
    %67 = vector.multi_reduction <maximumf>, %66, %cst_15 [0] : vector<16x128xf32> to vector<128xf32>
    %68 = vector.shape_cast %67 : vector<128xf32> to vector<1x128xf32>
    %69 = vector.broadcast %68 : vector<1x128xf32> to vector<16x128xf32>
    %70 = arith.cmpf oeq, %7, %69 : vector<16x128xf32>
    %71 = arith.extui %70 : vector<16x128xi1> to vector<16x128xi32>
    %72 = arith.sitofp %71 : vector<16x128xi32> to vector<16x128xf32>
    %cst_16 = arith.constant dense<0.000000e+00> : vector<128xf32>
    %73 = vector.multi_reduction <add>, %72, %cst_16 [0] : vector<16x128xf32> to vector<128xf32>
    %74 = vector.shape_cast %73 : vector<128xf32> to vector<1x128xf32>
    %cst_17 = arith.constant 4.000000e+00 : f32
    %75 = vector.broadcast %cst_17 : f32 to vector<1x128xf32>
    %76 = arith.cmpf olt, %61, %75 : vector<1x128xf32>
    %77 = arith.addf %61, %74 : vector<1x128xf32>
    %cst_18 = arith.constant 4.000000e+00 : f32
    %78 = vector.broadcast %cst_18 : f32 to vector<1x128xf32>
    %79 = arith.cmpf oge, %77, %78 : vector<1x128xf32>
    %80 = arith.andi %76, %79 : vector<1x128xi1>
    %81 = arith.select %80, %68, %60 : vector<1x128xi1>, vector<1x128xf32>
    %82 = vector.broadcast %81 : vector<1x128xf32> to vector<16x128xf32>
    %83 = arith.cmpf oge, %7, %82 : vector<16x128xf32>
    %84 = arith.extui %83 : vector<16x128xi1> to vector<16x128xi32>
    %85 = arith.sitofp %84 : vector<16x128xi32> to vector<16x128xf32>
    %86 = vector.shape_cast %2 : vector<32x128xf32> to vector<2x16x128xf32>
    %87 = vector.shape_cast %85 : vector<16x128xf32> to vector<1x16x128xf32>
    %88 = vector.broadcast %87 : vector<1x16x128xf32> to vector<2x16x128xf32>
    %89 = arith.mulf %86, %88 : vector<2x16x128xf32>
    %90 = vector.shape_cast %89 : vector<2x16x128xf32> to vector<32x128xf32>
    %91 = arith.truncf %90 : vector<32x128xf32> to vector<32x128xbf16>
    %c0_19 = arith.constant 0 : index
    %c0_20 = arith.constant 0 : index
    %92 = vector.load %arg3[%c0_19, %c0_20] : memref<16x32xbf16, #tpu.memory_space<vmem>>, vector<16x32xbf16>
    %cst_21 = arith.constant dense<0.000000e+00> : vector<16x128xf32>
    %93 = tpu.matmul %92, %91, %cst_21 {dimension_numbers = #tpu.dot_dimension_numbers<[1], [0], [0], [1], [0, 0, 1, 1], [], []>} : vector<16x32xbf16>, vector<32x128xbf16>, vector<16x128xf32> -> vector<16x128xf32>
    %c0_22 = arith.constant 0 : index
    %c0_23 = arith.constant 0 : index
    %94 = vector.load %arg4[%c0_22, %c0_23] : memref<16x128xf32, #tpu.memory_space<vmem>>, vector<16x128xf32>
    tpu.vector_store %arg4[%c0_22, %c0_23], %93 {strides = array<i32>} : memref<16x128xf32, #tpu.memory_space<vmem>>, vector<16x128xf32>,
    return
  }
  func.func @transform_0(%arg0: i32) -> (i32, i32) {
    %c0_i32 = arith.constant 0 : i32
    %c0_i32_0 = arith.constant 0 : i32
    return %c0_i32, %arg0 : i32, i32
  }
  func.func @transform_1(%arg0: i32) -> (i32, i32) {
    %c0_i32 = arith.constant 0 : i32
    %c0_i32_0 = arith.constant 0 : i32
    %c0_i32_1 = arith.constant 0 : i32
    return %c0_i32, %c0_i32_0 : i32, i32
  }
  func.func @transform_2(%arg0: i32) -> (i32, i32) {
    %c0_i32 = arith.constant 0 : i32
    %c0_i32_0 = arith.constant 0 : i32
    %c0_i32_1 = arith.constant 0 : i32
    return %c0_i32, %c0_i32_0 : i32, i32
  }
  func.func @transform_3(%arg0: i32) -> (i32, i32) {
    %c0_i32 = arith.constant 0 : i32
    %c0_i32_0 = arith.constant 0 : i32
    return %c0_i32, %arg0 : i32, i32
  }
}

</mosaic_0001>

<bundles_post_ra>
// kernel: tpu_custom_call.1
= control target key start
LH: loop header
LB: loop body
LE: loop exit
PB: predicated region body
PF: predicated region fallthrough
CT: control target
= control target key end

     0   :  { %vm22_vm0 = vcmask 130048   ;;  %s408_s0 = inlined_call_operand.vmem [shape: f32[16,128], index: 0, kind: input, shape index: {}]   ;;  %s409_s1 = inlined_call_operand.vmem [shape: f32[32,16], index: 1, kind: input, shape index: {}]   ;;  %s410_s2 = inlined_call_operand.vmem [shape: bf16[16,32], index: 2, kind: input, shape index: {}]   ;;  %s411_s3 = inlined_call_operand.hbm [shape: f32[16,128], index: 3, kind: output, shape index: {}]  }
   0x1   :  { %v17_v0 = vld [vmem:[%s408_s0 + $0x8] sm:$0xff]  ;;  %v16_v1 = vld [vmem:[%s408_s0] sm:$0xff]  ;;  %v20_v2 = vld [vmem:[%s409_s1 + $0x10] sm:$0xff] }
   0x2   :  { %256 = vmatpush.msra.mxu2 %v17_v0  ;;  %49 = vmatpush.msra.mxu0 %v17_v0  ;;  %v18_v3 = vld [vmem:[%s409_s1] sm:$0xff] }
   0x3   :  { %8 = vsyncpa [#allocation3], 0  ;;  %v21_v4 = vld [vmem:[%s409_s1 + $0x18] sm:$0xff]  ;;  %v19_v5 = vld [vmem:[%s409_s1 + $0x8] sm:$0xff]  ;;  %v288_v38 = vmov 0.0   ;;  %s289_s24 = smov [#allocation2]  }
   0x4   :  { %257 = vmatpush.msra.mxu2 %v16_v1  ;;  %50 = vmatpush.msra.mxu0 %v16_v1  ;;  %s222_s25 = sshll.u32 %s289_s24, 4  ;;  %s224_s28 = sshll.u32 %s411_s3, 4  ;;  %s223_s25 = int_to_ptr.vmem [resolvable:$true] %s222_s25  ;;  %s225_s28 = int_to_ptr.hbm [resolvable:$true] %s224_s28 }
   0x5   :  { %238 = vmatmul.msk.f32.vlgmr.msra.gmra.mxu2 %vm22_vm0, %v20_v2  ;;  %236 = vmatmul.msk.f32.vlgmr.msra.gmra.mxu0 %vm22_vm0, %v18_v3  ;;  %s290_s29 = smov 128   ;;  %s291_s30 = smov 8  }
   0xd   :  { %239 = vmatmul.msk.f32.gmra.mxu2 %vm22_vm0, %v21_v4  ;;  %237 = vmatmul.msk.f32.gmra.mxu0 %vm22_vm0, %v19_v5 }
  0x82   :  { %v330_v6 = vpop.f32.mrf.mxu0 }
  0x83   :  { %v64_v9 = vmul.f32 %v330_v6, %v330_v6 }
  0x88   :  { %v332_v7 = vpop.f32.mrf.mxu2 }
  0x89   :  { %v66_v10 = vmul.f32 %v332_v7, %v332_v7 }
  0x8a   :  { %v334_v8 = vpop.f32.mrf.mxu0 }
  0x8b   :  { %v65_v11 = vmul.f32 %v334_v8, %v334_v8  ;;  %v346_v14 = vadd.f32 %v66_v10, %v64_v9 }
  0x90   :  { %v342_v12 = vpop.f32.mrf.mxu2 }
  0x91   :  { %v67_v13 = vmul.f32 %v342_v12, %v342_v12 }
  0x93   :  { %v348_v15 = vadd.f32 %v67_v13, %v65_v11 }
  0x95   :  { %v70_v16 = vmax.f32 %v346_v14, %v348_v15 }
  0x97   :  { %v71_v17 = vrot.slane %v70_v16, 4 }
  0x99   :  { %v72_v18 = vmax.f32 %v70_v16, %v71_v17 }
  0x9b   :  { %v73_v19 = vrot.slane %v72_v18, 2 }
  0x9d   :  { %v74_v20 = vmax.f32 %v72_v18, %v73_v19 }
  0x9f   :  { %v75_v21 = vrot.slane %v74_v20, 1 }
  0xa1   :  { %v352_v22 = vmax.f32 %v74_v20, %v75_v21 }
  0xa3   :  { %vm92_vm1 = vcmp.lt.f32.partialorder %v346_v14, %v352_v22  ;;  %vm93_vm2 = vcmp.lt.f32.partialorder %v348_v15, %v352_v22  ;;  %vm77_vm7 = vcmp.eq.f32.partialorder %v346_v14, %v352_v22  ;;  %vm78_vm8 = vcmp.eq.f32.partialorder %v348_v15, %v352_v22 }
  0xa4   :  { %v94_v23 = vsel %vm92_vm1, %v346_v14, -1.0  ;;  %v95_v24 = vsel %vm93_vm2, %v348_v15, -1.0  ;;  %v240_v42 = vsel %vm77_vm7, 1.0, %v288_v38  ;;  %v241_v43 = vsel %vm78_vm8, 1.0, %v288_v38 }
  0xa5   :  { %v96_v25 = vmax.f32 %v94_v23, %v95_v24  ;;  %v83_v46 = vadd.f32 %v241_v43, %v240_v42 }
  0xa7   :  { %v97_v26 = vrot.slane %v96_v25, 4  ;;  %v84_v51 = vrot.slane %v83_v46, 4 }
  0xa9   :  { %v98_v27 = vmax.f32 %v96_v25, %v97_v26  ;;  %v85_v59 = vadd.f32 %v84_v51, %v83_v46 }
  0xab   :  { %v99_v28 = vrot.slane %v98_v27, 2  ;;  %v86_v0 = vrot.slane %v85_v59, 2 }
  0xad   :  { %v100_v29 = vmax.f32 %v98_v27, %v99_v28  ;;  %v87_v5 = vadd.f32 %v86_v0, %v85_v59 }
  0xaf   :  { %v101_v30 = vrot.slane %v100_v29, 1  ;;  %v88_v13 = vrot.slane %v87_v5, 1 }
  0xb1   :  { %v360_v31 = vmax.f32 %v100_v29, %v101_v30  ;;  %v89_v23 = vadd.f32 %v88_v13, %v87_v5 }
  0xb3   :  { %vm121_vm3 = vcmp.lt.f32.partialorder %v346_v14, %v360_v31  ;;  %vm122_vm4 = vcmp.lt.f32.partialorder %v348_v15, %v360_v31  ;;  %vm103_vm5 = vcmp.eq.f32.partialorder %v346_v14, %v360_v31  ;;  %vm104_vm6 = vcmp.eq.f32.partialorder %v348_v15, %v360_v31 }
  0xb4   :  { %v123_v32 = vsel %vm121_vm3, %v346_v14, -1.0  ;;  %v124_v33 = vsel %vm122_vm4, %v348_v15, -1.0  ;;  %v242_v39 = vsel %vm103_vm5, 1.0, %v288_v38  ;;  %v243_v40 = vsel %vm104_vm6, 1.0, %v288_v38 }
  0xb5   :  { %v125_v34 = vmax.f32 %v123_v32, %v124_v33  ;;  %v109_v44 = vadd.f32 %v243_v40, %v242_v39  ;;  %vm90_vm1 = vcmp.ge.f32.partialorder %v89_v23, 4.0  ;;  %vm116_vm2 = vcmp.lt.f32.partialorder %v89_v23, 4.0 }
  0xb7   :  { %v126_v35 = vrot.slane %v125_v34, 4  ;;  %v110_v48 = vrot.slane %v109_v44, 4 }
  0xb9   :  { %v127_v36 = vmax.f32 %v125_v34, %v126_v35  ;;  %v111_v56 = vadd.f32 %v110_v48, %v109_v44  ;;  %v91_v34 = vsel %vm90_vm1, %v352_v22, -1.0 }
  0xbb   :  { %v128_v37 = vrot.slane %v127_v36, 2  ;;  %v112_v62 = vrot.slane %v111_v56, 2 }
  0xbd   :  { %v129_v41 = vmax.f32 %v127_v36, %v128_v37  ;;  %v113_v3 = vadd.f32 %v112_v62, %v111_v56 }
  0xbf   :  { %v130_v45 = vrot.slane %v129_v41, 1  ;;  %v114_v11 = vrot.slane %v113_v3, 1 }
  0xc1   :  { %v131_v47 = vmax.f32 %v129_v41, %v130_v45  ;;  %v115_v20 = vadd.f32 %v114_v11, %v113_v3 }
  0xc3   :  { %vm132_vm9 = vcmp.eq.f32.partialorder %v346_v14, %v131_v47  ;;  %vm133_vm10 = vcmp.eq.f32.partialorder %v348_v15, %v131_v47  ;;  %vm150_vm11 = vcmp.lt.f32.partialorder %v346_v14, %v131_v47  ;;  %vm151_vm12 = vcmp.lt.f32.partialorder %v348_v15, %v131_v47 }
  0xc4   :  { %v244_v49 = vsel %vm132_vm9, 1.0, %v288_v38  ;;  %v245_v50 = vsel %vm133_vm10, 1.0, %v288_v38  ;;  %v152_v53 = vsel %vm150_vm11, %v346_v14, -1.0  ;;  %v153_v54 = vsel %vm151_vm12, %v348_v15, -1.0 }
  0xc5   :  { %v138_v52 = vadd.f32 %v245_v50, %v244_v49  ;;  %v154_v55 = vmax.f32 %v152_v53, %v153_v54  ;;  %v117_v26 = vadd.f32 %v115_v20, %v89_v23  ;;  %vm198_vm11 = vcmask 261120  }
  0xc7   :  { %v139_v57 = vrot.slane %v138_v52, 4  ;;  %v155_v58 = vrot.slane %v154_v55, 4  ;;  %vm118_vm15 = vcmp.ge.f32.partialorder %v117_v26, 4.0  ;;  %vm145_vm4 = vcmp.lt.f32.partialorder %v117_v26, 4.0 }
  0xc8   :  { %vm119_vm3 = vmand %vm116_vm2, %vm118_vm15 }
  0xc9   :  { %v140_v60 = vadd.f32 %v139_v57, %v138_v52  ;;  %v156_v61 = vmax.f32 %v154_v55, %v155_v58  ;;  %v120_v35 = vsel %vm119_vm3, %v360_v31, %v91_v34 }
  0xcb   :  { %v157_v63 = vrot.slane %v156_v61, 2  ;;  %v141_v1 = vrot.slane %v140_v60, 2 }
  0xcd   :  { %v158_v2 = vmax.f32 %v156_v61, %v157_v63  ;;  %v142_v9 = vadd.f32 %v141_v1, %v140_v60 }
  0xcf   :  { %v159_v4 = vrot.slane %v158_v2, 1  ;;  %v143_v16 = vrot.slane %v142_v9, 1 }
  0xd1   :  { %v160_v10 = vmax.f32 %v158_v2, %v159_v4  ;;  %v144_v24 = vadd.f32 %v143_v16, %v142_v9 }
  0xd3   :  { %vm161_vm13 = vcmp.eq.f32.partialorder %v346_v14, %v160_v10  ;;  %vm162_vm14 = vcmp.eq.f32.partialorder %v348_v15, %v160_v10  ;;  %v146_v28 = vadd.f32 %v144_v24, %v117_v26 }
  0xd4   :  { %v246_v17 = vsel %vm161_vm13, 1.0, %v288_v38  ;;  %v247_v18 = vsel %vm162_vm14, 1.0, %v288_v38 }
  0xd5   :  { %v167_v19 = vadd.f32 %v247_v18, %v246_v17  ;;  %vm147_vm0 = vcmp.ge.f32.partialorder %v146_v28, 4.0  ;;  %vm174_vm6 = vcmp.lt.f32.partialorder %v146_v28, 4.0 }
  0xd6   :  { %vm148_vm5 = vmand %vm145_vm4, %vm147_vm0 }
  0xd7   :  { %v168_v21 = vrot.slane %v167_v19, 4  ;;  %v149_v36 = vsel %vm148_vm5, %v131_v47, %v120_v35 }
  0xd9   :  { %v169_v25 = vadd.f32 %v168_v21, %v167_v19 }
  0xdb   :  { %v170_v27 = vrot.slane %v169_v25, 2 }
  0xdd   :  { %v171_v29 = vadd.f32 %v170_v27, %v169_v25 }
  0xdf   :  { %v172_v30 = vrot.slane %v171_v29, 1 }
  0xe1   :  { %v173_v32 = vadd.f32 %v172_v30, %v171_v29 }
  0xe3   :  { %v175_v33 = vadd.f32 %v173_v32, %v146_v28 }
  0xe5   :  { %vm176_vm7 = vcmp.ge.f32.partialorder %v175_v33, 4.0 }
  0xe6   :  { %vm177_vm8 = vmand %vm174_vm6, %vm176_vm7 }
  0xe7   :  { %v178_v37 = vsel %vm177_vm8, %v160_v10, %v149_v36 }
  0xe8   :  { %vm180_vm9 = vcmp.ge.f32.partialorder %v348_v15, %v178_v37  ;;  %vm179_vm10 = vcmp.ge.f32.partialorder %v346_v14, %v178_v37  ;;  %v255_v15 = vld [vmem:[%s410_s2] sm:$0xff] }
  0xe9   :  { %v249_v39 = vsel %vm180_vm9, 1.0, %v288_v38  ;;  %v248_v40 = vsel %vm179_vm10, 1.0, %v288_v38 }
  0xea   :  { %v188_v41 = vmul.f32 %v249_v39, %v342_v12  ;;  %v187_v42 = vmul.f32 %v248_v40, %v332_v7  ;;  %v186_v22 = vmul.f32 %v249_v39, %v334_v8  ;;  %v185_v43 = vmul.f32 %v248_v40, %v330_v6 }
  0xec   :  { %v190_v31 = vpack.c.bf16 %v188_v41, %v187_v42  ;;  %v189_v44 = vpack.c.bf16 %v186_v22, %v185_v43 }
  0xee   :  { %208 = vmatpush.bf16.msra.mxu1 %v190_v31 }
  0xf2   :  { %209 = vmatpush.bf16.msra.mxu1 %v189_v44 }
  0xf5   :  { %254 = vmatmul.msk.bf16.vlgmr.msra.gmra.mxu1 %vm198_vm11, %v255_v15 }
 0x172   :  { %v211_v14 = vpop.f32.mrf.mxu1 }
 0x173   :  { %216 = vst [vmem:[#allocation2] sm:$0xff] %v211_v14 }
 0x17a   :  { %v213_v6 = vpop.f32.mrf.mxu1 }
 0x17b   :  { %217 = vst [vmem:[#allocation2 + $0x8] sm:$0xff] %v213_v6 }
 0x17c   :  { %230 = dma.vmem_to_hbm [thread:$0]  %s223_s25, 256, %s225_s28, [#allocation3], %s290_s29, %s290_s29, %s291_s30  }
 0x17d   :  { %286 = dma.done.wait [#allocation3], 256  }
 0x17e   :  { %287 = vsyncadd [#allocation3], 4294967040 }
 0x17f   :  { %235 = vsyncpa [#allocation3], 1 }

</bundles_post_ra>
